<compile_context>
chip_gen: v7x
topology: tpu7x:2x2x1
jax: 0.10.0
libtpu: 0.0.40
codegen_flags: <defaults>
</compile_context>

<pallas_src>
import functools

import jax
import jax.numpy as jnp
from jax import lax
from jax.experimental import pallas as pl
from jax.experimental.pallas import tpu as pltpu


# ----------------------------------------------------------------------------- chip-aware budgets
def _vmem_limit_bytes() -> int:
    try:
        cap = pltpu.get_tpu_info().vmem_capacity_bytes
    except Exception:
        cap = 64 * 1024 * 1024  # conservative (v7x-sized) fallback
    return int(min(96 * 1024 * 1024, (cap * 3) // 4))


VMEM_LIMIT_BYTES = _vmem_limit_bytes()
_ROW_TILE_TARGET = 512 if VMEM_LIMIT_BYTES >= 64 * 1024 * 1024 else 256


# ----------------------------------------------------------------------------- tiling helpers
def _round_up(x: int, m: int) -> int:
    return (x + m - 1) // m * m


def _row_tile(m: int, target: int | None = None):
    """Return (tile, padded_m). Prefers divisors; otherwise pads to a 128/8 multiple."""
    if target is None:
        target = _ROW_TILE_TARGET
    for t in (target, 256, 128, 64, 32, 16, 8):
        if t <= m and m % t == 0:
            return t, m
    if m > 128:
        return 128, _round_up(m, 128)
    mp = _round_up(m, 8)
    return mp, mp


def _col_tile(n: int, target: int = 512) -> int:
    for t in (target, 256, 128):
        if t <= n and n % t == 0:
            return t
    return n  # full extent (always legal)


def _pick_divisor(n: int, candidates) -> int:
    for c in candidates:
        if c <= n and n % c == 0:
            return c
    return n


def _pad_rows(arr, m_pad):
    m = arr.shape[0]
    if m_pad == m:
        return arr
    pad = [(0, m_pad - m)] + [(0, 0)] * (arr.ndim - 1)
    return jnp.pad(arr, pad)


# ----------------------------------------------------------------------------- kernels
def _ln_linear_kernel(x_ref, g_ref, b_ref, w_ref, bias_ref, o_ref, xn_ref, *, eps):
    """LayerNorm(x) @ W + bias. LN result cached in xn_ref across the j (column) axis."""
    @pl.when(pl.program_id(1) == 0)
    def _():
        x = x_ref[...].astype(jnp.float32)
        mu = jnp.mean(x, axis=-1, keepdims=True)
        xc = x - mu
        var = jnp.mean(xc * xc, axis=-1, keepdims=True)
        xn = xc * lax.rsqrt(var + eps)
        xn = xn * g_ref[...] + b_ref[...]
        xn_ref[...] = xn.astype(xn_ref.dtype)          # bf16 for the MXU

    y = jnp.dot(xn_ref[...], w_ref[...], preferred_element_type=jnp.float32)
    y = y + bias_ref[...]
    o_ref[...] = y.astype(o_ref.dtype)


def _linear_scale_residual_kernel(a_ref, w_ref, bias_ref, scale_ref, res_ref, o_ref):
    """(a @ W + bias) * rowscale + residual  (rowscale = fused DropPath scale)."""
    y = jnp.dot(a_ref[...], w_ref[...], preferred_element_type=jnp.float32)
    y = y + bias_ref[...]
    y = y * scale_ref[...]
    o_ref[...] = (y + res_ref[...].astype(jnp.float32)).astype(o_ref.dtype)


def _mlp_fused_kernel(x_ref, g_ref, b_ref, wfc_ref, bfc_ref, wpj_ref, bpj_ref, scale_ref,
                      o_ref, xn_ref, acc_ref, *, eps):
    """ln_2 + c_fc + QuickGELU + c_proj + DropPath scale + residual, K-tiled over 4D."""
    k = pl.program_id(1)

    @pl.when(k == 0)
    def _():
        x = x_ref[...].astype(jnp.float32)
        mu = jnp.mean(x, axis=-1, keepdims=True)
        xc = x - mu
        var = jnp.mean(xc * xc, axis=-1, keepdims=True)
        xn = xc * lax.rsqrt(var + eps) * g_ref[...] + b_ref[...]
        xn_ref[...] = xn.astype(xn_ref.dtype)
        acc_ref[...] = jnp.zeros_like(acc_ref)

    h = jnp.dot(xn_ref[...], wfc_ref[...], preferred_element_type=jnp.float32)
    h = h + bfc_ref[...]
    h = h * jax.nn.sigmoid(1.702 * h)                   # QuickGELU in f32
    acc_ref[...] += jnp.dot(h.astype(wpj_ref.dtype), wpj_ref[...],
                            preferred_element_type=jnp.float32)

    @pl.when(k == pl.num_programs(1) - 1)
    def _():
        y = acc_ref[...] + bpj_ref[...]
        y = y * scale_ref[...]
        o_ref[...] = (y + x_ref[...].astype(jnp.float32)).astype(o_ref.dtype)


def _attn_kernel(kv_ref, *rest, d_model, n_head, scale, tq, has_mask):
    """Multi-head attention for one batch / one query tile. Output block is (tq, D)."""
    if has_mask:
        mask_ref, o_ref = rest
    else:
        (o_ref,) = rest
    dh = d_model // n_head

    start = pl.multiple_of(pl.program_id(1) * tq, tq)
    q_all = kv_ref[pl.ds(start, tq), :]                 # (tq, 3D) — query rows of this tile
    kv = kv_ref[...]                                    # (L, 3D)

    outs = []
    for h in range(n_head):                             # unrolled at trace time
        qh = q_all[:, h * dh:(h + 1) * dh]
        kh = kv[:, d_model + h * dh: d_model + (h + 1) * dh]
        vh = kv[:, 2 * d_model + h * dh: 2 * d_model + (h + 1) * dh]
        s = lax.dot_general(qh, kh, (((1,), (1,)), ((), ())),
                            preferred_element_type=jnp.float32)     # (tq, L)
        s = s * jnp.float32(scale)
        if has_mask:
            s = s + mask_ref[...]
        s = s - jnp.max(s, axis=-1, keepdims=True)
        p = jnp.exp(s)
        p = p * pl.reciprocal(jnp.sum(p, axis=-1, keepdims=True), approx=True)
        outs.append(jnp.dot(p.astype(vh.dtype), vh, preferred_element_type=jnp.float32))
    o_ref[...] = jnp.concatenate(outs, axis=-1).astype(o_ref.dtype)  # lane-dense (tq, D)


# ----------------------------------------------------------------------------- pallas wrappers
def ln_linear_pallas(x, gamma, beta, w, bias, *, eps, out_dtype):
    m, d = x.shape
    _, n = w.shape
    tm, m_pad = _row_tile(m)
    tn = _col_tile(n)
    xp = _pad_rows(x, m_pad)
    out = pl.pallas_call(
        functools.partial(_ln_linear_kernel, eps=float(eps)),
        out_shape=jax.ShapeDtypeStruct((m_pad, n), out_dtype),
        grid=(m_pad // tm, n // tn),
        in_specs=[
            pl.BlockSpec((tm, d), lambda i, j: (i, 0)),
            pl.BlockSpec((1, d), lambda i, j: (0, 0)),
            pl.BlockSpec((1, d), lambda i, j: (0, 0)),
            pl.BlockSpec((d, tn), lambda i, j: (0, j)),
            pl.BlockSpec((1, tn), lambda i, j: (0, j)),
        ],
        out_specs=pl.BlockSpec((tm, tn), lambda i, j: (i, j)),
        scratch_shapes=[pltpu.VMEM((tm, d), w.dtype)],
        compiler_params=pltpu.CompilerParams(
            dimension_semantics=("parallel", "arbitrary"),
            vmem_limit_bytes=VMEM_LIMIT_BYTES,
        ),
    )(xp, gamma.reshape(1, d).astype(jnp.float32), beta.reshape(1, d).astype(jnp.float32),
      w, bias.reshape(1, n).astype(jnp.float32))
    return out if m_pad == m else out[:m]


def linear_scale_residual_pallas(a, w, bias, rowscale, residual):
    m, k = a.shape
    _, n = w.shape
    tm, m_pad = _row_tile(m)
    tn = _col_tile(n)
    ap = _pad_rows(a, m_pad)
    sp = _pad_rows(rowscale, m_pad)
    rp = _pad_rows(residual, m_pad)
    out = pl.pallas_call(
        _linear_scale_residual_kernel,
        out_shape=jax.ShapeDtypeStruct((m_pad, n), residual.dtype),
        grid=(m_pad // tm, n // tn),
        in_specs=[
            pl.BlockSpec((tm, k), lambda i, j: (i, 0)),
            pl.BlockSpec((k, tn), lambda i, j: (0, j)),
            pl.BlockSpec((1, tn), lambda i, j: (0, j)),
            pl.BlockSpec((tm, 1), lambda i, j: (i, 0)),
            pl.BlockSpec((tm, tn), lambda i, j: (i, j)),
        ],
        out_specs=pl.BlockSpec((tm, tn), lambda i, j: (i, j)),
        compiler_params=pltpu.CompilerParams(
            dimension_semantics=("parallel", "parallel"),
            vmem_limit_bytes=VMEM_LIMIT_BYTES,
        ),
    )(ap, w, bias.reshape(1, n).astype(jnp.float32), sp, rp)
    return out if m_pad == m else out[:m]


def mlp_fused_pallas(x, gamma, beta, w_fc, b_fc, w_proj, b_proj, rowscale, *, eps):
    m, d = x.shape
    dh4 = w_fc.shape[1]
    tm, m_pad = _row_tile(m)
    tk = _col_tile(dh4)
    xp = _pad_rows(x, m_pad)
    sp = _pad_rows(rowscale, m_pad)
    out = pl.pallas_call(
        functools.partial(_mlp_fused_kernel, eps=float(eps)),
        out_shape=jax.ShapeDtypeStruct((m_pad, d), x.dtype),
        grid=(m_pad // tm, dh4 // tk),
        in_specs=[
            pl.BlockSpec((tm, d), lambda i, k: (i, 0)),   # x (LN input + residual)
            pl.BlockSpec((1, d), lambda i, k: (0, 0)),    # ln2 gamma
            pl.BlockSpec((1, d), lambda i, k: (0, 0)),    # ln2 beta
            pl.BlockSpec((d, tk), lambda i, k: (0, k)),   # w_fc column tile
            pl.BlockSpec((1, tk), lambda i, k: (0, k)),   # b_fc tile
            pl.BlockSpec((tk, d), lambda i, k: (k, 0)),   # w_proj row tile
            pl.BlockSpec((1, d), lambda i, k: (0, 0)),    # b_proj
            pl.BlockSpec((tm, 1), lambda i, k: (i, 0)),   # DropPath row scale
        ],
        out_specs=pl.BlockSpec((tm, d), lambda i, k: (i, 0)),
        scratch_shapes=[pltpu.VMEM((tm, d), w_fc.dtype),      # cached LN(x) in bf16
                        pltpu.VMEM((tm, d), jnp.float32)],    # f32 accumulator
        compiler_params=pltpu.CompilerParams(
            dimension_semantics=("parallel", "arbitrary"),
            vmem_limit_bytes=VMEM_LIMIT_BYTES,
        ),
    )(xp, gamma.reshape(1, d).astype(jnp.float32), beta.reshape(1, d).astype(jnp.float32),
      w_fc, b_fc.reshape(1, dh4).astype(jnp.float32),
      w_proj, b_proj.reshape(1, d).astype(jnp.float32), sp)
    return out if m_pad == m else out[:m]


def attention_pallas(qkv_bld, attn_mask, *, n_head, out_dtype):
    """qkv_bld: (B, L, 3D) packed [q|k|v], head-major inside each D section."""
    B, L, three_d = qkv_bld.shape
    d_model = three_d // 3
    dh = d_model // n_head
    tq = _pick_divisor(L, (256, 128, 64, 32, 16, 8))
    nq = L // tq
    kernel = functools.partial(_attn_kernel, d_model=d_model, n_head=n_head,
                               scale=dh ** -0.5, tq=tq, has_mask=attn_mask is not None)
    in_specs = [pl.BlockSpec((None, L, three_d), lambda b, qi: (b, 0, 0))]
    args = [qkv_bld]
    if attn_mask is not None:
        in_specs.append(pl.BlockSpec((tq, L), lambda b, qi: (qi, 0)))
        args.append(attn_mask.astype(jnp.float32))
    return pl.pallas_call(
        kernel,
        out_shape=jax.ShapeDtypeStruct((B, L, d_model), out_dtype),
        grid=(B, nq),
        in_specs=in_specs,
        out_specs=pl.BlockSpec((None, tq, d_model), lambda b, qi: (b, qi, 0)),
        compiler_params=pltpu.CompilerParams(
            dimension_semantics=("parallel", "parallel"),
            vmem_limit_bytes=VMEM_LIMIT_BYTES,
        ),
    )(*args)


# ----------------------------------------------------------------------------- module
class ResidualAttentionBlockPallas:
    """Forward-pass mirror of the PyTorch ResidualAttentionBlock (layer_num % 3 != 0 path)."""

    def __init__(self, d_model, n_head, drop_path_rate, num_frames, layer_num,
                 batch_size, cls_split, attn_mask=None, *, key,
                 compute_dtype=jnp.bfloat16):
        if layer_num % 3 == 0:
            # TODO(synk): TemporalPoolingAttn (temporal pooling) branch not implemented.
            raise NotImplementedError("TemporalPoolingAttn branch (layer_num % 3 == 0)")
        assert d_model % n_head == 0
        self.d_model, self.n_head = d_model, n_head
        self.head_dim = d_model // n_head
        self.drop_path_rate = float(drop_path_rate) if drop_path_rate else 0.0
        self.attn_mask = attn_mask
        self.eps = 1e-5
        self.compute_dtype = compute_dtype

        d = d_model
        ks = jax.random.split(key, 8)
        std = 0.02
        cd = compute_dtype
        # weights in (in_features, out_features) layout, stored in the MXU dtype (bf16)
        self.w_in = (jax.random.normal(ks[0], (d, 3 * d)) * std).astype(cd)
        self.b_in = (jax.random.normal(ks[1], (3 * d,)) * std).astype(jnp.float32)
        self.w_out = (jax.random.normal(ks[2], (d, d)) * std).astype(cd)
        self.b_out = (jax.random.normal(ks[3], (d,)) * std).astype(jnp.float32)
        self.w_fc = (jax.random.normal(ks[4], (d, 4 * d)) * std).astype(cd)
        self.b_fc = (jax.random.normal(ks[5], (4 * d,)) * std).astype(jnp.float32)
        self.w_proj = (jax.random.normal(ks[6], (4 * d, d)) * std).astype(cd)
        self.b_proj = (jax.random.normal(ks[7], (d,)) * std).astype(jnp.float32)
        self.ln1_g = jnp.ones((d,), jnp.float32)
        self.ln1_b = jnp.zeros((d,), jnp.float32)
        self.ln2_g = jnp.ones((d,), jnp.float32)
        self.ln2_b = jnp.zeros((d,), jnp.float32)

    # --- DropPath: per-sequence-position keep/scale vector sampled outside the kernels ---
    def _drop_path_scales(self, L, training, rng):
        if (not training) or self.drop_path_rate <= 0.0 or rng is None:
            ones = jnp.ones((L,), jnp.float32)
            return ones, ones
        keep_prob = 1.0 - self.drop_path_rate
        k1, k2 = jax.random.split(rng)
        s1 = jax.random.bernoulli(k1, keep_prob, (L,)).astype(jnp.float32) / keep_prob
        s2 = jax.random.bernoulli(k2, keep_prob, (L,)).astype(jnp.float32) / keep_prob
        return s1, s2

    def _forward(self, x, scale1, scale2):
        L, B, D = x.shape
        M = L * B
        cd = self.compute_dtype

        # batch-major internal layout: row index = b*L + l
        xb = jnp.transpose(x, (1, 0, 2)).reshape(M, D)
        row_s1 = jnp.tile(scale1, B).reshape(M, 1).astype(jnp.float32)
        row_s2 = jnp.tile(scale2, B).reshape(M, 1).astype(jnp.float32)

        # --- attention branch: ln_1 + QKV in-projection (fused) ---
        qkv = ln_linear_pallas(xb, self.ln1_g, self.ln1_b, self.w_in, self.b_in,
                               eps=self.eps, out_dtype=cd)                    # (M, 3D) bf16

        mask = None if self.attn_mask is None else self.attn_mask
        attn = attention_pallas(qkv.reshape(B, L, 3 * D), mask,
                                n_head=self.n_head, out_dtype=cd)             # (B, L, D) bf16

        # out_proj + DropPath scale + residual (fused epilogue)
        x_attn = linear_scale_residual_pallas(attn.reshape(M, D), self.w_out, self.b_out,
                                              row_s1, xb)                     # (M, D) f32

        # --- MLP branch: ln_2 + c_fc + QuickGELU + c_proj + DropPath scale + residual ---
        out = mlp_fused_pallas(x_attn, self.ln2_g, self.ln2_b, self.w_fc, self.b_fc,
                               self.w_proj, self.b_proj, row_s2, eps=self.eps)  # (M, D)
        return out.reshape(B, L, D).transpose(1, 0, 2)

    def __call__(self, x, training=False, rng=None):
        s1, s2 = self._drop_path_scales(x.shape[0], training, rng)
        return self._forward(x, s1, s2)

    # --- pure-JAX reference with identical cast points (bf16 at the dots, f32 elsewhere) ---
    def reference(self, x, scale1=None, scale2=None):
        L, B, D = x.shape
        H, Dh = self.n_head, self.head_dim
        cd = self.compute_dtype
        f32 = jnp.float32
        if scale1 is None:
            scale1 = jnp.ones((L,), f32)
        if scale2 is None:
            scale2 = jnp.ones((L,), f32)

        def ln(t, g, b):
            tf = t.astype(f32)
            mu = tf.mean(-1, keepdims=True)
            var = ((tf - mu) ** 2).mean(-1, keepdims=True)
            return (tf - mu) * lax.rsqrt(var + self.eps) * g + b

        xf = x.astype(f32)
        xn = ln(xf, self.ln1_g, self.ln1_b).astype(cd)
        qkv = (jnp.dot(xn.reshape(L * B, D), self.w_in, preferred_element_type=f32)
               + self.b_in).astype(cd)
        qkv = qkv.reshape(L, B, 3, H, Dh)
        q = qkv[:, :, 0].transpose(1, 2, 0, 3)
        k = qkv[:, :, 1].transpose(1, 2, 0, 3)
        v = qkv[:, :, 2].transpose(1, 2, 0, 3)
        s = jnp.einsum("bhld,bhmd->bhlm", q, k, preferred_element_type=f32) * (Dh ** -0.5)
        if self.attn_mask is not None:
            s = s + self.attn_mask.astype(f32)
        p = jax.nn.softmax(s, axis=-1)
        o = jnp.einsum("bhlm,bhmd->bhld", p.astype(cd), v,
                       preferred_element_type=f32).astype(cd)
        o = o.transpose(2, 0, 1, 3).reshape(L * B, D)
        attn_out = (jnp.dot(o, self.w_out, preferred_element_type=f32)
                    + self.b_out).reshape(L, B, D)
        x1 = xf + attn_out * scale1[:, None, None]
        h = ln(x1, self.ln2_g, self.ln2_b).astype(cd)
        h = jnp.dot(h.reshape(L * B, D), self.w_fc, preferred_element_type=f32) + self.b_fc
        h = h * jax.nn.sigmoid(1.702 * h)
        mlp_out = (jnp.dot(h.astype(cd), self.w_proj, preferred_element_type=f32)
                   + self.b_proj).reshape(L, B, D)
        x2 = x1 + mlp_out * scale2[:, None, None]
        return x2.astype(x.dtype)


# ----------------------------------------------------------------------------- demo / checks
if __name__ == "__main__":
    key = jax.random.PRNGKey(0)
    k_param, k_x = jax.random.split(key)

    d_model, n_head = 32, 4
    seq_len, batch = 8, 2  # x layout is (seq, batch, d_model), as in nn.MultiheadAttention

    block = ResidualAttentionBlockPallas(
        d_model=d_model, n_head=n_head, drop_path_rate=0.2, num_frames=8,
        layer_num=1, batch_size=batch, cls_split=0, attn_mask=None, key=k_param)

    x = jax.random.normal(k_x, (seq_len, batch, d_model), dtype=jnp.float32)

    # eval mode (DropPath == identity)
    y_eval = jax.block_until_ready(block(x, training=False))
    y_eval_ref = jax.block_until_ready(block.reference(x))
    assert y_eval.shape == x.shape
    assert bool(jnp.allclose(y_eval, y_eval_ref, rtol=2e-2, atol=2e-2)), "eval mismatch"

    # training mode: DropPath scales fused into the matmul epilogues
    rng = jax.random.PRNGKey(7)
    y_train = jax.block_until_ready(block(x, training=True, rng=rng))
    s1, s2 = block._drop_path_scales(seq_len, True, rng)
    y_train_ref = jax.block_until_ready(block.reference(x, s1, s2))
    assert y_train.shape == x.shape
    assert bool(jnp.allclose(y_train, y_train_ref, rtol=2e-2, atol=2e-2)), "train mismatch"

    print("KERNEL_OK")
</pallas_src>

<mosaic_0001>
module attributes {stable_mosaic.version = 11 : i64} {
  func.func @_ln_linear_kernel(%arg0: i32, %arg1: i32, %arg2: memref<16x32xf32, #tpu.memory_space<vmem>>, %arg3: memref<1x32xf32, #tpu.memory_space<vmem>>, %arg4: memref<1x32xf32, #tpu.memory_space<vmem>>, %arg5: memref<32x96xbf16, #tpu.memory_space<vmem>>, %arg6: memref<1x96xf32, #tpu.memory_space<vmem>>, %arg7: memref<16x96xbf16, #tpu.memory_space<vmem>>, %arg8: memref<16x32xbf16, #tpu.memory_space<vmem>>) attributes {dimension_semantics = [#tpu.dimension_semantics<parallel>, #tpu.dimension_semantics<arbitrary>], iteration_bounds = array<i64: 1, 1>, scalar_prefetch = 0 : i64, scratch_operands = 1 : i64, tpu.core_type = #tpu.core_type<tc>, window_params = [{transform_indices = @transform_0, window_bounds = array<i64: 16, 32>}, {pipeline_mode = #tpu.pipeline_mode<synchronous>, transform_indices = @transform_1, window_bounds = array<i64: 1, 32>}, {pipeline_mode = #tpu.pipeline_mode<synchronous>, transform_indices = @transform_2, window_bounds = array<i64: 1, 32>}, {transform_indices = @transform_3, window_bounds = array<i64: 32, 96>}, {transform_indices = @transform_4, window_bounds = array<i64: 1, 96>}, {transform_indices = @transform_5, window_bounds = array<i64: 16, 96>}]} {
    %c0_i32 = arith.constant 0 : i32
    %0 = arith.cmpi eq, %arg1, %c0_i32 : i32
    %1 = arith.extui %0 : i1 to i32
    %c0_i32_0 = arith.constant 0 : i32
    %2 = arith.cmpi ne, %1, %c0_i32_0 : i32
    scf.if %2 {
      %c0_8 = arith.constant 0 : index
      %c0_9 = arith.constant 0 : index
      %11 = vector.load %arg2[%c0_8, %c0_9] : memref<16x32xf32, #tpu.memory_space<vmem>>, vector<16x32xf32>
      %cst_10 = arith.constant dense<0.000000e+00> : vector<16xf32>
      %12 = vector.multi_reduction <add>, %11, %cst_10 [1] : vector<16x32xf32> to vector<16xf32>
      %13 = vector.shape_cast %12 : vector<16xf32> to vector<16x1xf32>
      %cst_11 = arith.constant 3.200000e+01 : f32
      %14 = vector.broadcast %cst_11 : f32 to vector<16x1xf32>
      %15 = arith.divf %13, %14 : vector<16x1xf32>
      %16 = vector.broadcast %15 : vector<16x1xf32> to vector<16x32xf32>
      %17 = arith.subf %11, %16 : vector<16x32xf32>
      %18 = arith.mulf %17, %17 : vector<16x32xf32>
      %cst_12 = arith.constant dense<0.000000e+00> : vector<16xf32>
      %19 = vector.multi_reduction <add>, %18, %cst_12 [1] : vector<16x32xf32> to vector<16xf32>
      %20 = vector.shape_cast %19 : vector<16xf32> to vector<16x1xf32>
      %cst_13 = arith.constant 3.200000e+01 : f32
      %21 = vector.broadcast %cst_13 : f32 to vector<16x1xf32>
      %22 = arith.divf %20, %21 : vector<16x1xf32>
      %cst_14 = arith.constant 9.99999974E-6 : f32
      %23 = vector.broadcast %cst_14 : f32 to vector<16x1xf32>
      %24 = arith.addf %22, %23 : vector<16x1xf32>
      %25 = math.rsqrt %24 : vector<16x1xf32>
      %26 = vector.broadcast %25 : vector<16x1xf32> to vector<16x32xf32>
      %27 = arith.mulf %17, %26 : vector<16x32xf32>
      %c0_15 = arith.constant 0 : index
      %c0_16 = arith.constant 0 : index
      %28 = vector.load %arg3[%c0_15, %c0_16] : memref<1x32xf32, #tpu.memory_space<vmem>>, vector<1x32xf32>
      %29 = vector.broadcast %28 : vector<1x32xf32> to vector<16x32xf32>
      %30 = arith.mulf %27, %29 : vector<16x32xf32>
      %c0_17 = arith.constant 0 : index
      %c0_18 = arith.constant 0 : index
      %31 = vector.load %arg4[%c0_17, %c0_18] : memref<1x32xf32, #tpu.memory_space<vmem>>, vector<1x32xf32>
      %32 = vector.broadcast %31 : vector<1x32xf32> to vector<16x32xf32>
      %33 = arith.addf %30, %32 : vector<16x32xf32>
      %34 = arith.truncf %33 : vector<16x32xf32> to vector<16x32xbf16>
      %c0_19 = arith.constant 0 : index
      %c0_20 = arith.constant 0 : index
      %35 = vector.load %arg8[%c0_19, %c0_20] : memref<16x32xbf16, #tpu.memory_space<vmem>>, vector<16x32xbf16>
      tpu.vector_store %arg8[%c0_19, %c0_20], %34 {strides = array<i32>} : memref<16x32xbf16, #tpu.memory_space<vmem>>, vector<16x32xbf16>,
    } else {
    }
    %c0 = arith.constant 0 : index
    %c0_1 = arith.constant 0 : index
    %3 = vector.load %arg8[%c0, %c0_1] : memref<16x32xbf16, #tpu.memory_space<vmem>>, vector<16x32xbf16>
    %c0_2 = arith.constant 0 : index
    %c0_3 = arith.constant 0 : index
    %4 = vector.load %arg5[%c0_2, %c0_3] : memref<32x96xbf16, #tpu.memory_space<vmem>>, vector<32x96xbf16>
    %cst = arith.constant dense<0.000000e+00> : vector<16x96xf32>
    %5 = tpu.matmul %3, %4, %cst {dimension_numbers = #tpu.dot_dimension_numbers<[1], [0], [0], [1], [0, 0, 1, 1], [], []>} : vector<16x32xbf16>, vector<32x96xbf16>, vector<16x96xf32> -> vector<16x96xf32>
    %c0_4 = arith.constant 0 : index
    %c0_5 = arith.constant 0 : index
    %6 = vector.load %arg6[%c0_4, %c0_5] : memref<1x96xf32, #tpu.memory_space<vmem>>, vector<1x96xf32>
    %7 = vector.broadcast %6 : vector<1x96xf32> to vector<16x96xf32>
    %8 = arith.addf %5, %7 : vector<16x96xf32>
    %9 = arith.truncf %8 : vector<16x96xf32> to vector<16x96xbf16>
    %c0_6 = arith.constant 0 : index
    %c0_7 = arith.constant 0 : index
    %10 = vector.load %arg7[%c0_6, %c0_7] : memref<16x96xbf16, #tpu.memory_space<vmem>>, vector<16x96xbf16>
    tpu.vector_store %arg7[%c0_6, %c0_7], %9 {strides = array<i32>} : memref<16x96xbf16, #tpu.memory_space<vmem>>, vector<16x96xbf16>,
    return
  }
  func.func @transform_0(%arg0: i32, %arg1: i32) -> (i32, i32) {
    %c0_i32 = arith.constant 0 : i32
    %c0_i32_0 = arith.constant 0 : i32
    return %arg0, %c0_i32 : i32, i32
  }
  func.func @transform_1(%arg0: i32, %arg1: i32) -> (i32, i32) {
    %c0_i32 = arith.constant 0 : i32
    %c0_i32_0 = arith.constant 0 : i32
    %c0_i32_1 = arith.constant 0 : i32
    return %c0_i32, %c0_i32_0 : i32, i32
  }
  func.func @transform_2(%arg0: i32, %arg1: i32) -> (i32, i32) {
    %c0_i32 = arith.constant 0 : i32
    %c0_i32_0 = arith.constant 0 : i32
    %c0_i32_1 = arith.constant 0 : i32
    return %c0_i32, %c0_i32_0 : i32, i32
  }
  func.func @transform_3(%arg0: i32, %arg1: i32) -> (i32, i32) {
    %c0_i32 = arith.constant 0 : i32
    %c0_i32_0 = arith.constant 0 : i32
    return %c0_i32, %arg1 : i32, i32
  }
  func.func @transform_4(%arg0: i32, %arg1: i32) -> (i32, i32) {
    %c0_i32 = arith.constant 0 : i32
    %c0_i32_0 = arith.constant 0 : i32
    return %c0_i32, %arg1 : i32, i32
  }
  func.func @transform_5(%arg0: i32, %arg1: i32) -> (i32, i32) {
    %c0_i32 = arith.constant 0 : i32
    return %arg0, %arg1 : i32, i32
  }
}

</mosaic_0001>

<bundles_post_ra>
// kernel: tpu_custom_call.1
= control target key start
LH: loop header
LB: loop body
LE: loop exit
PB: predicated region body
PF: predicated region fallthrough
CT: control target
= control target key end

     0   :  { %10 = vsyncpa [#allocation4], 0  ;;  %s406_s0 = inlined_call_operand.hbm [shape: f32[16,32], index: 0, kind: input, shape index: {}]   ;;  %s407_s1 = inlined_call_operand.vmem [shape: f32[1,32], index: 1, kind: input, shape index: {}]   ;;  %s408_s2 = inlined_call_operand.vmem [shape: f32[1,32], index: 2, kind: input, shape index: {}]   ;;  %s409_s3 = inlined_call_operand.hbm [shape: bf16[32,96], index: 3, kind: input, shape index: {}]   ;;  %s410_s4 = inlined_call_operand.vmem [shape: f32[1,96], index: 4, kind: input, shape index: {}]   ;;  %s411_s5 = inlined_call_operand.hbm [shape: bf16[16,96], index: 5, kind: output, shape index: {}]  }
   0x1   :  { %11 = vsyncpa [#allocation7], 0 }
   0x2   :  { %12 = vsyncpa [#allocation5], 0  ;;  %s310_s18 = smov [#allocation3]   ;;  %s238_s22 = scalar_lea.hbm %s406_s0, 256 }
   0x3   :  { %s18_s19 = sshll.u32 %s310_s18, 4  ;;  %p239_p0 = scmp.ne.s32.totalorder %s406_s0, %s238_s22  ;;  %s19_s19 = int_to_ptr.vmem [resolvable:$true] %s18_s19 }
   0x4   :  { %p242_p1 = scmp.lt.u32.totalorder %s238_s22, %s406_s0 }
   0x6   :  { %p244_p2 = pnand %p242_p1, %p239_p0 }
   0x8   :  { %247 = shalt.err (!%p244_p2)
}
   0x9   :  { %s248_s27 = scalar_lea.vmem %s19_s19, 256  ;;  %p253_p4 = scmp.lt.s32.totalorder %s19_s19, %s19_s19 }
   0xa   :  { %p249_p3 = scmp.ne.s32.totalorder %s19_s19, %s248_s27  ;;  %p254_p5 = scmp.lt.s32.totalorder %s248_s27, %s248_s27 }
   0xc   :  { %p255_p6 = por %p254_p5, %p253_p4 }
   0xe   :  { %p256_p7 = pnand %p255_p6, %p249_p3 }
  0x10   :  { %259 = shalt.err (!%p256_p7)
}
  0x11   :  { %s311_s28 = smov 128   ;;  %s312_s29 = smov 8  }
  0x12   :  { %24 = dma.hbm_to_vmem [thread:$0]  %s406_s0, 256, %s19_s19, [#allocation4], %s311_s28, %s311_s28, %s312_s29  }
  0x13   :  { %s313_s7 = smov [#allocation6]   ;;  %s260_s11 = scalar_lea.hbm %s409_s3, 256 }
  0x14   :  { %s34_s8 = sshll.u32 %s313_s7, 4  ;;  %p261_p8 = scmp.ne.s32.totalorder %s409_s3, %s260_s11  ;;  %s35_s8 = int_to_ptr.vmem [resolvable:$true] %s34_s8 }
  0x15   :  { %p264_p9 = scmp.lt.u32.totalorder %s260_s11, %s409_s3 }
  0x17   :  { %p266_p10 = pnand %p264_p9, %p261_p8 }
  0x19   :  { %269 = shalt.err (!%p266_p10)
}
  0x1a   :  { %s270_s16 = scalar_lea.vmem %s35_s8, 256  ;;  %p275_p12 = scmp.lt.s32.totalorder %s35_s8, %s35_s8 }
  0x1b   :  { %p271_p11 = scmp.ne.s32.totalorder %s35_s8, %s270_s16  ;;  %p276_p13 = scmp.lt.s32.totalorder %s270_s16, %s270_s16 }
  0x1d   :  { %p277_p0 = por %p276_p13, %p275_p12 }
  0x1f   :  { %p278_p1 = pnand %p277_p0, %p271_p11 }
  0x21   :  { %281 = shalt.err (!%p278_p1)
}
  0x22   :  { %s314_s0 = smov 64   ;;  %s315_s17 = smov 4  }
  0x23   :  { %40 = dma.hbm_to_vmem [thread:$0]  %s409_s3, 256, %s35_s8, [#allocation7], %s314_s0, %s314_s0, %s315_s17  }
  0x24   :  { %304 = dma.done.wait [#allocation4], 256  }
  0x25   :  { %305 = vsyncadd [#allocation4], 4294967040 }
  0x26   :  { %306 = dma.done.wait [#allocation7], 256  }
  0x27   :  { %307 = vsyncadd [#allocation7], 4294967040  ;;  %vm56_vm0 = vcmask 261120   ;;  %v54_v0 = vld [vmem:[#allocation3] sm:$0xff]  ;;  %v55_v1 = vld [vmem:[#allocation3 + $0x8] sm:$0xff]  ;;  %v316_v15 = vmov 0.0  }
  0x28   :  { %v57_v2 = vsel %vm56_vm0, %v54_v0, 0.0  ;;  %v60_v3 = vsel %vm56_vm0, %v55_v1, 0.0  ;;  %v232_v14 = vld [vmem:[#allocation6] sm:$0xff]   ;;  %215 = vmatprep.subr.bf16.mxu0 %v316_v15  ;;  %v233_v16 = vld [vmem:[#allocation6 + $0x8] sm:$0xff]   ;;  %vm317_vm1 = vmmov 0   ;;  %vm181_vm2 = vcmask 781312  }
  0x29   :  { %58 = vadd.xlane.f32.xlu0 %v57_v2  ;;  %216 = vmatpush3.bf16.msra.mxu0 %v232_v14  ;;  %v202_v25 = vld [vmem:[%s407_s1] ss:$0 sm:$0xff]  ;;  %s318_s1 = smov [#allocation8]  }
  0x2a   :  { %219 = vmatprep.mubr.msk.bf16.mxu0 %vm317_vm1, %v316_v15  ;;  %217 = vmatprep.subr.bf16.mxu0 %v316_v15  ;;  %v203_v29 = vld [vmem:[%s408_s2] ss:$0 sm:$0xff]  ;;  %s189_s2 = sshll.u32 %s318_s1, 4  ;;  %s190_s2 = int_to_ptr.vmem [resolvable:$true] %s189_s2 }
  0x2b   :  { %v204_v35 = vld [vmem:[%s410_s4] ss:$0 sm:$0xff]  ;;  %s282_s25 = scalar_lea.vmem %s190_s2, 128  ;;  %p287_p3 = scmp.lt.s32.totalorder %s190_s2, %s190_s2 }
  0x2c   :  { %p283_p2 = scmp.ne.s32.totalorder %s190_s2, %s282_s25  ;;  %p288_p4 = scmp.lt.s32.totalorder %s282_s25, %s282_s25 }
  0x2d   :  { %61 = vadd.xlane.f32.xlu0 %v60_v3  ;;  %218 = vmatpush3.bf16.msra.mxu0 %v233_v16 }
  0x2e   :  { %p289_p5 = por %p288_p4, %p287_p3 }
  0x30   :  { %p290_p6 = pnand %p289_p5, %p283_p2 }
  0xb6   :  { %v59_v4 = vpop.xlane.xlu0 %58 }
  0xb7   :  { %v64_v5 = vmul.f32 0.03125, %v59_v4 }
  0xb9   :  { %v66_v6 = vsub.f32 %v54_v0, %v64_v5 }
  0xba   :  { %v62_v7 = vpop.xlane.xlu0 %61 }
  0xbb   :  { %v65_v8 = vmul.f32 0.03125, %v62_v7  ;;  %v68_v9 = vmul.f32 %v66_v6, %v66_v6 }
  0xbd   :  { %v67_v10 = vsub.f32 %v55_v1, %v65_v8  ;;  %v70_v11 = vsel %vm56_vm0, %v68_v9, 0.0 }
  0xbe   :  { %71 = vadd.xlane.f32.xlu1 %v70_v11 }
  0xbf   :  { %v69_v12 = vmul.f32 %v67_v10, %v67_v10 }
  0xc1   :  { %v73_v13 = vsel %vm56_vm0, %v69_v12, 0.0 }
  0xc2   :  { %74 = vadd.xlane.f32.xlu1 %v73_v13 }
 0x14b   :  { %v72_v17 = vpop.xlane.xlu1 %71 }
 0x14c   :  { %v76_v18 = vmul.f32 0.03125, %v72_v17 }
 0x14e   :  { %v78_v19 = vadd.f32 1e-05, %v76_v18 }
 0x14f   :  { %v75_v20 = vpop.xlane.xlu1 %74 }
 0x150   :  { %234 = vrsqrt.f32 %v78_v19  ;;  %v77_v21 = vmul.f32 0.03125, %v75_v20 }
 0x152   :  { %v79_v22 = vadd.f32 1e-05, %v77_v21 }
 0x154   :  { %236 = vrsqrt.f32 %v79_v22 }
 0x15a   :  { %v235_v23 = vpop.eup %234 }
 0x15b   :  { %v82_v24 = vmul.f32 %v235_v23, %v66_v6 }
 0x15d   :  { %v91_v27 = vmul.f32 %v202_v25, %v82_v24 }
 0x15e   :  { %v237_v26 = vpop.eup %236 }
 0x15f   :  { %v83_v28 = vmul.f32 %v237_v26, %v67_v10  ;;  %v100_v31 = vadd.f32 %v203_v29, %v91_v27 }
 0x161   :  { %v92_v30 = vmul.f32 %v202_v25, %v83_v28 }
 0x163   :  { %v101_v32 = vadd.f32 %v203_v29, %v92_v30 }
 0x165   :  { %v102_v33 = vpack.c.bf16 %v101_v32, %v100_v31 }
 0x167   :  { %103 = vst.msk [vmem:[#allocation2] sm:$0xff] %vm56_vm0, %v102_v33 }
 0x16e   :  { %v104_v34 = vld [vmem:[#allocation2] sm:$0xff] }
 0x16f   :  { %220 = vmatmul.mubr.msk.bf16.vlgmr.msra.gmra.mrb[0].mxu0 %vm56_vm0, %v104_v34 }
 0x242   :  { %v166_v36 = vpop.f32.mrb[0].mxu0 }
 0x243   :  { %v167_v37 = vadd.f32 %v204_v35, %v166_v36  ;;  %v221_v38 = vpop.f32.mrb[1].mxu0 }
 0x244   :  { %v169_v39 = vpop.f32.mrb[2].mxu0 }
 0x245   :  { %v210_v40 = vpack.c.bf16 %v167_v37, %v167_v37  ;;  %v170_v41 = vadd.f32 %v204_v35, %v169_v39  ;;  %v222_v42 = vpop.f32.mrb[3].mxu0 }
 0x247   :  { %v211_v43 = vpack.c.bf16 %v170_v41, %v170_v41  ;;  %182 = vst.msk [vmem:[#allocation8] sm:$0xf] %vm181_vm2, %v210_v40 }
 0x249   :  { %183 = vst.msk [vmem:[#allocation8 + $0x4] sm:$0xf] %vm181_vm2, %v211_v43 }
 0x24a   :  { %293 = shalt.err (!%p290_p6)
}
 0x24b   :  { %s294_s27 = scalar_lea.hbm %s411_s5, 128 }
 0x24c   :  { %p295_p7 = scmp.ne.s32.totalorder %s411_s5, %s294_s27  ;;  %p298_p8 = scmp.lt.u32.totalorder %s294_s27, %s411_s5 }
 0x24e   :  { %p300_p9 = pnand %p298_p8, %p295_p7 }
 0x250   :  { %303 = shalt.err (!%p300_p9)
}
 0x251   :  { %195 = dma.vmem_to_hbm [thread:$0]  %s190_s2, 128, %s411_s5, [#allocation5], %s314_s0, %s314_s0, %s315_s17  }
 0x252   :  { %308 = dma.done.wait [#allocation5], 128  }
 0x253   :  { %309 = vsyncadd [#allocation5], 4294967168 }
 0x254   :  { %199 = vsyncpa [#allocation4], 1 }
 0x255   :  { %200 = vsyncpa [#allocation7], 1 }
 0x256   :  { %201 = vsyncpa [#allocation5], 1 }

</bundles_post_ra>
